<compile_context>
chip_gen: v7x
topology: tpu7x:2x2x1
jax: 0.10.0
libtpu: 0.0.40
codegen_flags: <defaults>
</compile_context>

<pallas_src>
import functools

import jax
import jax.numpy as jnp
from jax.experimental import pallas as pl
from jax.experimental.pallas import tpu as pltpu

LANE = 128       # TPU lane width: output slab is kept lane-dense
SUBLANE = 8      # sublane granularity for batch tiles
MAX_TILE = 1024  # cap on batch-tile rows for very large replay batches


def _round_up(n, m):
    return ((n + m - 1) // m) * m


def _pick_tile(batch):
    """Batch-tile rows.

    batch <= 128: one grid step, block == full batch (no partial blocks,
                  no extra pipeline steps on single-TC v5e/v6e).
    batch  > 128: split into two (nearly) equal sublane-aligned tiles so the
                  'parallel' batch axis gives each v7x TensorCore a tile; the
                  extra ~0.35us grid step is noise on v5e/v6e.
    """
    if batch <= 128:
        return batch
    return min(MAX_TILE, _round_up(-(-batch // 2), SUBLANE))


def dqn_kernel(x_ref, w1_ref, b1_ref, w2_ref, b2_ref,
               w3_ref, b3_ref, w4_ref, b4_ref, o_ref):
    # x tile: (TB, in_dims) f32 -> bf16 for the MXU.  Weights bf16, biases f32.
    # Matmuls accumulate in f32; bias add in f32; ReLU done after the bf16
    # cast (commutes with max(.,0)) so the live intermediate is half-size.
    x = x_ref[...].astype(jnp.bfloat16)

    h = jnp.dot(x, w1_ref[...], preferred_element_type=jnp.float32) + b1_ref[...]
    h = jnp.maximum(h.astype(jnp.bfloat16), 0.0)

    h = jnp.dot(h, w2_ref[...], preferred_element_type=jnp.float32) + b2_ref[...]
    h = jnp.maximum(h.astype(jnp.bfloat16), 0.0)

    h = jnp.dot(h, w3_ref[...], preferred_element_type=jnp.float32) + b3_ref[...]
    h = jnp.maximum(h.astype(jnp.bfloat16), 0.0)

    out = jnp.dot(h, w4_ref[...], preferred_element_type=jnp.float32) + b4_ref[...]
    o_ref[...] = out.astype(o_ref.dtype)


@functools.partial(jax.jit, static_argnames=("out_dims",))
def dqn_forward(x, params, out_dims):
    (w1, b1, w2, b2, w3, b3, w4, b4) = params   # w4/b4 already lane-padded
    batch, in_dims = x.shape
    out_pad = w4.shape[1]

    tb = _pick_tile(batch)
    grid = (pl.cdiv(batch, tb),)

    const = lambda i: (0, 0)  # weights/biases: fetched once, VMEM-resident
    out = pl.pallas_call(
        dqn_kernel,
        out_shape=jax.ShapeDtypeStruct((batch, out_pad), jnp.float32),
        grid=grid,
        in_specs=[
            pl.BlockSpec((tb, in_dims), lambda i: (i, 0)),        # x batch tile
            pl.BlockSpec(w1.shape, const), pl.BlockSpec(b1.shape, const),
            pl.BlockSpec(w2.shape, const), pl.BlockSpec(b2.shape, const),
            pl.BlockSpec(w3.shape, const), pl.BlockSpec(b3.shape, const),
            pl.BlockSpec(w4.shape, const), pl.BlockSpec(b4.shape, const),
        ],
        out_specs=pl.BlockSpec((tb, out_pad), lambda i: (i, 0)),
        compiler_params=pltpu.CompilerParams(
            dimension_semantics=("parallel",)),   # v7x: one tile per TC
    )(x, w1, b1, w2, b2, w3, b3, w4, b4)

    return out[:, :out_dims]


def init_params(key, in_dims, out_dims):
    """PyTorch nn.Linear-style init: U(-1/sqrt(fan_in), 1/sqrt(fan_in)).

    Weights stored bf16 (native MXU dtype, halved HBM->VMEM traffic); biases
    kept f32 (added to the f32 accumulator).  The final layer is padded to a
    multiple of 128 output lanes HERE (once), so the kernel's store is a full
    unmasked lane-dense vst and the per-call wrapper does no weight work.
    """
    sizes = [(in_dims, 256), (256, 256), (256, 128), (128, out_dims)]
    params = []
    for i, (fan_in, fan_out) in enumerate(sizes):
        kw, kb = jax.random.split(jax.random.fold_in(key, i))
        bound = 1.0 / (fan_in ** 0.5)
        w = jax.random.uniform(kw, (fan_in, fan_out), jnp.float32, -bound, bound)
        b = jax.random.uniform(kb, (1, fan_out), jnp.float32, -bound, bound)
        if i == len(sizes) - 1:
            pad = _round_up(fan_out, LANE) - fan_out
            w = jnp.pad(w, ((0, 0), (0, pad)))
            b = jnp.pad(b, ((0, 0), (0, pad)))
        params.extend([w.astype(jnp.bfloat16), b])
    return tuple(params)


def reference_forward(x, params):
    """Pure-JAX reference mirroring the kernel's bf16-in / f32-accumulate math.
    Returns the lane-padded (batch, 128) output; caller slices real columns."""
    (w1, b1, w2, b2, w3, b3, w4, b4) = params

    def dense(h, w, b):
        return jnp.dot(h.astype(jnp.bfloat16), w,
                       preferred_element_type=jnp.float32) + b

    h = jnp.maximum(dense(x, w1, b1), 0.0)
    h = jnp.maximum(dense(h, w2, b2), 0.0)
    h = jnp.maximum(dense(h, w3, b3), 0.0)
    return dense(h, w4, b4)


# TODO(synk): Double-DQN target-network fusion + in-kernel argmax/Q-gather
# (both weight sets resident in one pallas_call) is the biggest remaining
# lever, but it changes the module's forward interface, so it is left out to
# preserve the original forward-pass semantics.


if __name__ == "__main__":
    key = jax.random.PRNGKey(0)
    in_dims, out_dims, batch = 8, 4, 2   # Lunar Lander: obs=8, actions=4

    kx, kp = jax.random.split(key)
    x = jax.random.normal(kx, (batch, in_dims), jnp.float32)
    params = init_params(kp, in_dims, out_dims)

    # Act path: tiny batch, single grid step, block == full batch.
    out = dqn_forward(x, params, out_dims)
    jax.block_until_ready(out)
    ref = reference_forward(x, params)[:, :out_dims]
    assert out.shape == (batch, out_dims)
    assert jnp.allclose(out, ref, atol=1e-2, rtol=1e-2), (
        jnp.max(jnp.abs(out - ref)))

    # Replay-batch path: 2 grid steps of 256 rows (one per v7x TensorCore).
    xb = jax.random.normal(jax.random.fold_in(kx, 1), (512, in_dims), jnp.float32)
    outb = dqn_forward(xb, params, out_dims)
    jax.block_until_ready(outb)
    refb = reference_forward(xb, params)[:, :out_dims]
    assert outb.shape == (512, out_dims)
    assert jnp.allclose(outb, refb, atol=1e-2, rtol=1e-2)

    print("KERNEL_OK")
</pallas_src>

<mosaic_0001>
module attributes {stable_mosaic.version = 11 : i64} {
  func.func @dqn_kernel(%arg0: i32, %arg1: memref<2x8xf32, #tpu.memory_space<vmem>>, %arg2: memref<8x256xbf16, #tpu.memory_space<vmem>>, %arg3: memref<1x256xf32, #tpu.memory_space<vmem>>, %arg4: memref<256x256xbf16, #tpu.memory_space<vmem>>, %arg5: memref<1x256xf32, #tpu.memory_space<vmem>>, %arg6: memref<256x128xbf16, #tpu.memory_space<vmem>>, %arg7: memref<1x128xf32, #tpu.memory_space<vmem>>, %arg8: memref<128x128xbf16, #tpu.memory_space<vmem>>, %arg9: memref<1x128xf32, #tpu.memory_space<vmem>>, %arg10: memref<2x128xf32, #tpu.memory_space<vmem>>) attributes {dimension_semantics = [#tpu.dimension_semantics<parallel>], iteration_bounds = array<i64: 1>, scalar_prefetch = 0 : i64, scratch_operands = 0 : i64, tpu.core_type = #tpu.core_type<tc>, window_params = [{transform_indices = @transform_0, window_bounds = array<i64: 2, 8>}, {pipeline_mode = #tpu.pipeline_mode<synchronous>, transform_indices = @transform_1, window_bounds = array<i64: 8, 256>}, {pipeline_mode = #tpu.pipeline_mode<synchronous>, transform_indices = @transform_2, window_bounds = array<i64: 1, 256>}, {pipeline_mode = #tpu.pipeline_mode<synchronous>, transform_indices = @transform_3, window_bounds = array<i64: 256, 256>}, {pipeline_mode = #tpu.pipeline_mode<synchronous>, transform_indices = @transform_4, window_bounds = array<i64: 1, 256>}, {pipeline_mode = #tpu.pipeline_mode<synchronous>, transform_indices = @transform_5, window_bounds = array<i64: 256, 128>}, {pipeline_mode = #tpu.pipeline_mode<synchronous>, transform_indices = @transform_6, window_bounds = array<i64: 1, 128>}, {pipeline_mode = #tpu.pipeline_mode<synchronous>, transform_indices = @transform_7, window_bounds = array<i64: 128, 128>}, {pipeline_mode = #tpu.pipeline_mode<synchronous>, transform_indices = @transform_8, window_bounds = array<i64: 1, 128>}, {transform_indices = @transform_9, window_bounds = array<i64: 2, 128>}]} {
    %c0 = arith.constant 0 : index
    %c0_0 = arith.constant 0 : index
    %0 = vector.load %arg1[%c0, %c0_0] : memref<2x8xf32, #tpu.memory_space<vmem>>, vector<2x8xf32>
    %1 = arith.truncf %0 : vector<2x8xf32> to vector<2x8xbf16>
    %c0_1 = arith.constant 0 : index
    %c0_2 = arith.constant 0 : index
    %2 = vector.load %arg2[%c0_1, %c0_2] : memref<8x256xbf16, #tpu.memory_space<vmem>>, vector<8x256xbf16>
    %cst = arith.constant dense<0.000000e+00> : vector<2x256xf32>
    %3 = tpu.matmul %1, %2, %cst {dimension_numbers = #tpu.dot_dimension_numbers<[1], [0], [0], [1], [0, 0, 1, 1], [], []>} : vector<2x8xbf16>, vector<8x256xbf16>, vector<2x256xf32> -> vector<2x256xf32>
    %c0_3 = arith.constant 0 : index
    %c0_4 = arith.constant 0 : index
    %4 = vector.load %arg3[%c0_3, %c0_4] : memref<1x256xf32, #tpu.memory_space<vmem>>, vector<1x256xf32>
    %5 = vector.broadcast %4 : vector<1x256xf32> to vector<2x256xf32>
    %6 = arith.addf %3, %5 : vector<2x256xf32>
    %7 = arith.truncf %6 : vector<2x256xf32> to vector<2x256xbf16>
    %cst_5 = arith.constant 0.000000e+00 : bf16
    %8 = vector.broadcast %cst_5 : bf16 to vector<2x256xbf16>
    %9 = arith.maximumf %7, %8 : vector<2x256xbf16>
    %c0_6 = arith.constant 0 : index
    %c0_7 = arith.constant 0 : index
    %10 = vector.load %arg4[%c0_6, %c0_7] : memref<256x256xbf16, #tpu.memory_space<vmem>>, vector<256x256xbf16>
    %cst_8 = arith.constant dense<0.000000e+00> : vector<2x256xf32>
    %11 = tpu.matmul %9, %10, %cst_8 {dimension_numbers = #tpu.dot_dimension_numbers<[1], [0], [0], [1], [0, 0, 1, 1], [], []>} : vector<2x256xbf16>, vector<256x256xbf16>, vector<2x256xf32> -> vector<2x256xf32>
    %c0_9 = arith.constant 0 : index
    %c0_10 = arith.constant 0 : index
    %12 = vector.load %arg5[%c0_9, %c0_10] : memref<1x256xf32, #tpu.memory_space<vmem>>, vector<1x256xf32>
    %13 = vector.broadcast %12 : vector<1x256xf32> to vector<2x256xf32>
    %14 = arith.addf %11, %13 : vector<2x256xf32>
    %15 = arith.truncf %14 : vector<2x256xf32> to vector<2x256xbf16>
    %cst_11 = arith.constant 0.000000e+00 : bf16
    %16 = vector.broadcast %cst_11 : bf16 to vector<2x256xbf16>
    %17 = arith.maximumf %15, %16 : vector<2x256xbf16>
    %c0_12 = arith.constant 0 : index
    %c0_13 = arith.constant 0 : index
    %18 = vector.load %arg6[%c0_12, %c0_13] : memref<256x128xbf16, #tpu.memory_space<vmem>>, vector<256x128xbf16>
    %cst_14 = arith.constant dense<0.000000e+00> : vector<2x128xf32>
    %19 = tpu.matmul %17, %18, %cst_14 {dimension_numbers = #tpu.dot_dimension_numbers<[1], [0], [0], [1], [0, 0, 1, 1], [], []>} : vector<2x256xbf16>, vector<256x128xbf16>, vector<2x128xf32> -> vector<2x128xf32>
    %c0_15 = arith.constant 0 : index
    %c0_16 = arith.constant 0 : index
    %20 = vector.load %arg7[%c0_15, %c0_16] : memref<1x128xf32, #tpu.memory_space<vmem>>, vector<1x128xf32>
    %21 = vector.broadcast %20 : vector<1x128xf32> to vector<2x128xf32>
    %22 = arith.addf %19, %21 : vector<2x128xf32>
    %23 = arith.truncf %22 : vector<2x128xf32> to vector<2x128xbf16>
    %cst_17 = arith.constant 0.000000e+00 : bf16
    %24 = vector.broadcast %cst_17 : bf16 to vector<2x128xbf16>
    %25 = arith.maximumf %23, %24 : vector<2x128xbf16>
    %c0_18 = arith.constant 0 : index
    %c0_19 = arith.constant 0 : index
    %26 = vector.load %arg8[%c0_18, %c0_19] : memref<128x128xbf16, #tpu.memory_space<vmem>>, vector<128x128xbf16>
    %cst_20 = arith.constant dense<0.000000e+00> : vector<2x128xf32>
    %27 = tpu.matmul %25, %26, %cst_20 {dimension_numbers = #tpu.dot_dimension_numbers<[1], [0], [0], [1], [0, 0, 1, 1], [], []>} : vector<2x128xbf16>, vector<128x128xbf16>, vector<2x128xf32> -> vector<2x128xf32>
    %c0_21 = arith.constant 0 : index
    %c0_22 = arith.constant 0 : index
    %28 = vector.load %arg9[%c0_21, %c0_22] : memref<1x128xf32, #tpu.memory_space<vmem>>, vector<1x128xf32>
    %29 = vector.broadcast %28 : vector<1x128xf32> to vector<2x128xf32>
    %30 = arith.addf %27, %29 : vector<2x128xf32>
    %c0_23 = arith.constant 0 : index
    %c0_24 = arith.constant 0 : index
    %31 = vector.load %arg10[%c0_23, %c0_24] : memref<2x128xf32, #tpu.memory_space<vmem>>, vector<2x128xf32>
    tpu.vector_store %arg10[%c0_23, %c0_24], %30 {strides = array<i32>} : memref<2x128xf32, #tpu.memory_space<vmem>>, vector<2x128xf32>,
    return
  }
  func.func @transform_0(%arg0: i32) -> (i32, i32) {
    %c0_i32 = arith.constant 0 : i32
    %c0_i32_0 = arith.constant 0 : i32
    return %arg0, %c0_i32 : i32, i32
  }
  func.func @transform_1(%arg0: i32) -> (i32, i32) {
    %c0_i32 = arith.constant 0 : i32
    %c0_i32_0 = arith.constant 0 : i32
    %c0_i32_1 = arith.constant 0 : i32
    return %c0_i32, %c0_i32_0 : i32, i32
  }
  func.func @transform_2(%arg0: i32) -> (i32, i32) {
    %c0_i32 = arith.constant 0 : i32
    %c0_i32_0 = arith.constant 0 : i32
    %c0_i32_1 = arith.constant 0 : i32
    return %c0_i32, %c0_i32_0 : i32, i32
  }
  func.func @transform_3(%arg0: i32) -> (i32, i32) {
    %c0_i32 = arith.constant 0 : i32
    %c0_i32_0 = arith.constant 0 : i32
    %c0_i32_1 = arith.constant 0 : i32
    return %c0_i32, %c0_i32_0 : i32, i32
  }
  func.func @transform_4(%arg0: i32) -> (i32, i32) {
    %c0_i32 = arith.constant 0 : i32
    %c0_i32_0 = arith.constant 0 : i32
    %c0_i32_1 = arith.constant 0 : i32
    return %c0_i32, %c0_i32_0 : i32, i32
  }
  func.func @transform_5(%arg0: i32) -> (i32, i32) {
    %c0_i32 = arith.constant 0 : i32
    %c0_i32_0 = arith.constant 0 : i32
    %c0_i32_1 = arith.constant 0 : i32
    return %c0_i32, %c0_i32_0 : i32, i32
  }
  func.func @transform_6(%arg0: i32) -> (i32, i32) {
    %c0_i32 = arith.constant 0 : i32
    %c0_i32_0 = arith.constant 0 : i32
    %c0_i32_1 = arith.constant 0 : i32
    return %c0_i32, %c0_i32_0 : i32, i32
  }
  func.func @transform_7(%arg0: i32) -> (i32, i32) {
    %c0_i32 = arith.constant 0 : i32
    %c0_i32_0 = arith.constant 0 : i32
    %c0_i32_1 = arith.constant 0 : i32
    return %c0_i32, %c0_i32_0 : i32, i32
  }
  func.func @transform_8(%arg0: i32) -> (i32, i32) {
    %c0_i32 = arith.constant 0 : i32
    %c0_i32_0 = arith.constant 0 : i32
    %c0_i32_1 = arith.constant 0 : i32
    return %c0_i32, %c0_i32_0 : i32, i32
  }
  func.func @transform_9(%arg0: i32) -> (i32, i32) {
    %c0_i32 = arith.constant 0 : i32
    %c0_i32_0 = arith.constant 0 : i32
    return %arg0, %c0_i32 : i32, i32
  }
}

</mosaic_0001>

<bundles_post_ra>
// kernel: dqn_forward.1
= control target key start
LH: loop header
LB: loop body
LE: loop exit
PB: predicated region body
PF: predicated region fallthrough
CT: control target
= control target key end

     0   :  { %14 = vsyncpa [#allocation3], 0  ;;  %s1242_s0 = inlined_call_operand.hbm [shape: f32[2,8], index: 0, kind: input, shape index: {}]   ;;  %s1243_s1 = inlined_call_operand.hbm [shape: bf16[8,256], index: 1, kind: input, shape index: {}]   ;;  %s1244_s2 = inlined_call_operand.vmem [shape: f32[1,256], index: 2, kind: input, shape index: {}]   ;;  %s1245_s3 = inlined_call_operand.hbm [shape: bf16[256,256], index: 3, kind: input, shape index: {}]   ;;  %s1246_s4 = inlined_call_operand.vmem [shape: f32[1,256], index: 4, kind: input, shape index: {}]   ;;  %s1247_s5 = inlined_call_operand.hbm [shape: bf16[256,128], index: 5, kind: input, shape index: {}]   ;;  %s1248_s6 = inlined_call_operand.vmem [shape: f32[1,128], index: 6, kind: input, shape index: {}]   ;;  %s1249_s7 = inlined_call_operand.hbm [shape: bf16[128,128], index: 7, kind: input, shape index: {}]   ;;  %s1250_s8 = inlined_call_operand.vmem [shape: f32[1,128], index: 8, kind: input, shape index: {}]   ;;  %s1251_s9 = inlined_call_operand.hbm [shape: f32[2,128], index: 9, kind: output, shape index: {}]  }
   0x1   :  { %15 = vsyncpa [#allocation6], 0 }
   0x2   :  { %16 = vsyncpa [#allocation9], 0 }
   0x3   :  { %17 = vsyncpa [#allocation4], 0  ;;  %s1069_s30 = smov [#allocation5]   ;;  %s1070_s11 = smov [#allocation8]  }
   0x4   :  { %s34_s10 = sshll.u32 %s1069_s30, 4  ;;  %s59_s12 = sshll.u32 %s1070_s11, 4  ;;  %s35_s10 = int_to_ptr.vmem [resolvable:$true] %s34_s10  ;;  %s1132_s12 = int_to_ptr.vmem [resolvable:$true] %s59_s12 }
   0x5   :  { %s929_s15 = scalar_lea.hbm %s1243_s1, 128 }
   0x6   :  { %p930_p0 = scmp.ne.s32.totalorder %s1243_s1, %s929_s15  ;;  %p933_p1 = scmp.lt.u32.totalorder %s929_s15, %s1243_s1 }
   0x8   :  { %p935_p2 = pnand %p933_p1, %p930_p0 }
   0xa   :  { %938 = shalt.err (!%p935_p2)
}
   0xb   :  { %s939_s20 = scalar_lea.vmem %s35_s10, 128  ;;  %p944_p4 = scmp.lt.s32.totalorder %s35_s10, %s35_s10 }
   0xc   :  { %p940_p3 = scmp.ne.s32.totalorder %s35_s10, %s939_s20  ;;  %p945_p5 = scmp.lt.s32.totalorder %s939_s20, %s939_s20 }
   0xe   :  { %p946_p6 = por %p945_p5, %p944_p4 }
  0x10   :  { %p947_p7 = pnand %p946_p6, %p940_p3 }
  0x12   :  { %950 = shalt.err (!%p947_p7)
}
  0x13   :  { %37 = dma.hbm_to_vmem [thread:$0]  %s1243_s1, 128, %s35_s10, [#allocation6]  }
  0x14   :  { %s951_s25 = scalar_lea.hbm %s1247_s5, 2048 }
  0x15   :  { %p952_p8 = scmp.ne.s32.totalorder %s1247_s5, %s951_s25  ;;  %p955_p9 = scmp.lt.u32.totalorder %s951_s25, %s1247_s5 }
  0x17   :  { %p957_p10 = pnand %p955_p9, %p952_p8 }
  0x19   :  { %960 = shalt.err (!%p957_p10)
}
  0x1a   :  { %s961_s30 = scalar_lea.vmem %s1132_s12, 2048  ;;  %p966_p12 = scmp.lt.s32.totalorder %s1132_s12, %s1132_s12 }
  0x1b   :  { %p962_p11 = scmp.ne.s32.totalorder %s1132_s12, %s961_s30  ;;  %p967_p13 = scmp.lt.s32.totalorder %s961_s30, %s961_s30 }
  0x1d   :  { %p968_p0 = por %p967_p13, %p966_p12 }
  0x1f   :  { %p969_p1 = pnand %p968_p0, %p962_p11 }
  0x21   :  { %972 = shalt.err (!%p969_p1)
}
  0x22   :  { %s1071_s1 = smov 64   ;;  %s1072_s10 = smov 4  }
  0x23   :  { %65 = dma.hbm_to_vmem [thread:$0]  %s1247_s5, 2048, %s1132_s12, [#allocation9], %s1071_s1, %s1071_s1, %s1072_s10  }
  0x24   :  { %s1073_s14 = smov [#allocation2]   ;;  %s1074_s16 = smov [#allocation7]  }
  0x25   :  { %s24_s15 = sshll.u32 %s1073_s14, 4  ;;  %s45_s17 = sshll.u32 %s1074_s16, 4  ;;  %s25_s15 = int_to_ptr.vmem [resolvable:$true] %s24_s15  ;;  %s1166_s17 = int_to_ptr.vmem [resolvable:$true] %s45_s17 }
  0x26   :  { %s973_s20 = scalar_lea.hbm %s1242_s0, 32 }
  0x27   :  { %p974_p2 = scmp.ne.s32.totalorder %s1242_s0, %s973_s20  ;;  %p977_p3 = scmp.lt.u32.totalorder %s973_s20, %s1242_s0 }
  0x29   :  { %p979_p4 = pnand %p977_p3, %p974_p2 }
  0x2b   :  { %982 = shalt.err (!%p979_p4)
}
  0x2c   :  { %s983_s5 = scalar_lea.vmem %s25_s15, 32  ;;  %p988_p6 = scmp.lt.s32.totalorder %s25_s15, %s25_s15 }
  0x2d   :  { %p984_p5 = scmp.ne.s32.totalorder %s25_s15, %s983_s5  ;;  %p989_p7 = scmp.lt.s32.totalorder %s983_s5, %s983_s5 }
  0x2f   :  { %p990_p8 = por %p989_p7, %p988_p6 }
  0x31   :  { %p991_p9 = pnand %p990_p8, %p984_p5 }
  0x33   :  { %994 = shalt.err (!%p991_p9)
}
  0x34   :  { %27 = dma.hbm_to_vmem [thread:$0]  %s1242_s0, 32, %s25_s15, [#allocation3]  }
  0x35   :  { %s995_s28 = scalar_lea.hbm %s1245_s3, 4096 }
  0x36   :  { %p996_p10 = scmp.ne.s32.totalorder %s1245_s3, %s995_s28  ;;  %p999_p11 = scmp.lt.u32.totalorder %s995_s28, %s1245_s3 }
  0x38   :  { %p1001_p12 = pnand %p999_p11, %p996_p10 }
  0x3a   :  { %1004 = shalt.err (!%p1001_p12)
}
  0x3b   :  { %s1005_s14 = scalar_lea.vmem %s1166_s17, 4096  ;;  %p1010_p0 = scmp.lt.s32.totalorder %s1166_s17, %s1166_s17 }
  0x3c   :  { %p1006_p13 = scmp.ne.s32.totalorder %s1166_s17, %s1005_s14  ;;  %p1011_p1 = scmp.lt.s32.totalorder %s1005_s14, %s1005_s14 }
  0x3e   :  { %p1012_p2 = por %p1011_p1, %p1010_p0 }
  0x40   :  { %p1013_p3 = pnand %p1012_p2, %p1006_p13 }
  0x42   :  { %1016 = shalt.err (!%p1013_p3)
}
  0x43   :  { %s1075_s0 = smov 128   ;;  %s1076_s15 = smov 8  }
  0x44   :  { %51 = dma.hbm_to_vmem [thread:$0]  %s1245_s3, 4096, %s1166_s17, [#allocation6], %s1075_s0, %s1075_s0, %s1076_s15  }
  0x45   :  { %s1077_s19 = smov [#allocation10]   ;;  %s1017_s23 = scalar_lea.hbm %s1249_s7, 1024 }
  0x46   :  { %s73_s20 = sshll.u32 %s1077_s19, 4  ;;  %p1018_p4 = scmp.ne.s32.totalorder %s1249_s7, %s1017_s23  ;;  %s74_s20 = int_to_ptr.vmem [resolvable:$true] %s73_s20 }
  0x47   :  { %p1021_p5 = scmp.lt.u32.totalorder %s1017_s23, %s1249_s7 }
  0x49   :  { %p1023_p6 = pnand %p1021_p5, %p1018_p4 }
  0x4b   :  { %1026 = shalt.err (!%p1023_p6)
}
  0x4c   :  { %s1027_s26 = scalar_lea.vmem %s74_s20, 1024  ;;  %p1032_p8 = scmp.lt.s32.totalorder %s74_s20, %s74_s20 }
  0x4d   :  { %p1028_p7 = scmp.ne.s32.totalorder %s74_s20, %s1027_s26  ;;  %p1033_p9 = scmp.lt.s32.totalorder %s1027_s26, %s1027_s26 }
  0x4f   :  { %p1034_p10 = por %p1033_p9, %p1032_p8 }
  0x51   :  { %p1035_p11 = pnand %p1034_p10, %p1028_p7 }
  0x53   :  { %1038 = shalt.err (!%p1035_p11)
}
  0x54   :  { %79 = dma.hbm_to_vmem [thread:$0]  %s1249_s7, 1024, %s74_s20, [#allocation9], %s1071_s1, %s1071_s1, %s1072_s10  }
  0x55   :  { %1061 = dma.done.wait [#allocation3], 32  }
  0x56   :  { %1062 = vsyncadd [#allocation3], 4294967264 }
  0x57   :  { %1063 = dma.done.wait [#allocation6], 4224  }
  0x58   :  { %1064 = vsyncadd [#allocation6], 4294963072 }
  0x59   :  { %1065 = dma.done.wait [#allocation9], 3072  }
  0x5a   :  { %1066 = vsyncadd [#allocation9], 4294964224  ;;  %v1078_v0 = vmov 0   ;;  %v100_v1 = vld [vmem:[#allocation5] sm:$0xff]  ;;  %vm122_vm0 = vcmask 1043456   ;;  %vm118_vm1 = vcmask 64512   ;;  %v103_v51 = vlaneseq }
  0x5b   :  { %161 = vmatprep.mubr.bf16.mxu0 %v1078_v0  ;;  %v98_v2 = vld [vmem:[#allocation2] sm:$0x3]  ;;  %v730_v3 = vcombine.high %v100_v1, %v100_v1  ;;  %v729_v4 = vcombine.low %v100_v1, %v100_v1  ;;  %v857_v5 = vld [vmem:[#allocation7 + $0x4] ss:$8 sps:$4 sm:$0xff]   ;;  %v859_v6 = vld [vmem:[#allocation7] ss:$8 sps:$4 sm:$0xff]  }
  0x5c   :  { %v860_v7 = vld [vmem:[#allocation7 + $0x14] ss:$8 sps:$4 sm:$0xff]   ;;  %v99_v9 = vpack.c.bf16 %v98_v2, %v98_v2  ;;  %378 = vmatprep.subr.bf16.mxu1 %v857_v5  ;;  %v862_v10 = vld [vmem:[#allocation7 + $0x10] ss:$8 sps:$4 sm:$0xff]   ;;  %v863_v11 = vld [vmem:[#allocation7 + $0x24] ss:$8 sps:$4 sm:$0xff]  }
  0x5d   :  { %731 = vmatprep.subr.msk.bf16.mxu0 %vm122_vm0, %v730_v3  ;;  %v124_v8 = vsel %vm122_vm0, %v729_v4, 0  ;;  %379 = vmatpush1.bf16.msra.mxu1 %v859_v6  ;;  %v865_v12 = vld [vmem:[#allocation7 + $0x20] ss:$8 sps:$4 sm:$0xff]   ;;  %v866_v13 = vld [vmem:[#allocation7 + $0x34] ss:$8 sps:$4 sm:$0xff]   ;;  %v104_v52 = vshrl.u32 %v103_v51, 7 }
  0x5e   :  { %130 = vmatpush1.bf16.msra.mxu0 %v124_v8  ;;  %380 = vmatprep.subr.bf16.mxu1 %v860_v7  ;;  %v868_v14 = vld [vmem:[#allocation7 + $0x30] ss:$8 sps:$4 sm:$0xff]   ;;  %v869_v15 = vld [vmem:[#allocation7 + $0x44] ss:$8 sps:$4 sm:$0xff]   ;;  %v871_v16 = vld [vmem:[#allocation7 + $0x40] ss:$8 sps:$4 sm:$0xff]  }
  0x5f   :  { %v872_v17 = vld [vmem:[#allocation7 + $0x54] ss:$8 sps:$4 sm:$0xff]   ;;  %v874_v18 = vld [vmem:[#allocation7 + $0x50] ss:$8 sps:$4 sm:$0xff]   ;;  %v875_v19 = vld [vmem:[#allocation7 + $0x64] ss:$8 sps:$4 sm:$0xff]  }
  0x60   :  { %v877_v20 = vld [vmem:[#allocation7 + $0x60] ss:$8 sps:$4 sm:$0xff]   ;;  %v878_v21 = vld [vmem:[#allocation7 + $0x74] ss:$8 sps:$4 sm:$0xff]   ;;  %v880_v22 = vld [vmem:[#allocation7 + $0x70] ss:$8 sps:$4 sm:$0xff]  }
  0x61   :  { %732 = vmatmul.mubr.msk.bf16.vlgmr.msra.gmra.mrb[0].mxu0 %vm118_vm1, %v99_v9  ;;  %381 = vmatpush1.bf16.msra.mxu1 %v862_v10  ;;  %v881_v23 = vld [vmem:[#allocation7 + $0x84] ss:$8 sps:$4 sm:$0xff]   ;;  %v883_v24 = vld [vmem:[#allocation7 + $0x80] ss:$8 sps:$4 sm:$0xff]   ;;  %v884_v25 = vld [vmem:[#allocation7 + $0x94] ss:$8 sps:$4 sm:$0xff]  }
  0x62   :  { %382 = vmatprep.subr.bf16.mxu1 %v863_v11  ;;  %v886_v26 = vld [vmem:[#allocation7 + $0x90] ss:$8 sps:$4 sm:$0xff]   ;;  %v887_v27 = vld [vmem:[#allocation7 + $0xa4] ss:$8 sps:$4 sm:$0xff]   ;;  %v889_v28 = vld [vmem:[#allocation7 + $0xa0] ss:$8 sps:$4 sm:$0xff]  }
  0x63   :  { %v890_v29 = vld [vmem:[#allocation7 + $0xb4] ss:$8 sps:$4 sm:$0xff]   ;;  %v892_v30 = vld [vmem:[#allocation7 + $0xb0] ss:$8 sps:$4 sm:$0xff]   ;;  %v893_v31 = vld [vmem:[#allocation7 + $0xc4] ss:$8 sps:$4 sm:$0xff]  }
  0x64   :  { %v895_v32 = vld [vmem:[#allocation7 + $0xc0] ss:$8 sps:$4 sm:$0xff]   ;;  %v896_v33 = vld [vmem:[#allocation7 + $0xd4] ss:$8 sps:$4 sm:$0xff]   ;;  %v898_v34 = vld [vmem:[#allocation7 + $0xd0] ss:$8 sps:$4 sm:$0xff]  }
  0x65   :  { %383 = vmatpush1.bf16.msra.mxu1 %v865_v12  ;;  %v899_v35 = vld [vmem:[#allocation7 + $0xe4] ss:$8 sps:$4 sm:$0xff]   ;;  %v901_v36 = vld [vmem:[#allocation7 + $0xe0] ss:$8 sps:$4 sm:$0xff]   ;;  %v902_v37 = vld [vmem:[#allocation7 + $0xf4] ss:$8 sps:$4 sm:$0xff]  }
  0x66   :  { %384 = vmatprep.subr.bf16.mxu1 %v866_v13  ;;  %v904_v38 = vld [vmem:[#allocation7 + $0xf0] ss:$8 sps:$4 sm:$0xff]   ;;  %v905_v39 = vld [vmem:[#allocation8 + $0x40] sm:$0xff]   ;;  %v907_v41 = vld [vmem:[#allocation8 + $0x48] sm:$0xff]   ;;  %v105_v53 = vsub.s32 0, %v104_v52  ;;  %v109_v55 = vsub.s32 1, %v104_v52 }
  0x67   :  { %v906_v40 = vld [vmem:[#allocation8] sm:$0xff]   ;;  %791 = vmatprep.subr.bf16.mxu0 %v905_v39  ;;  %v908_v42 = vld [vmem:[#allocation8 + $0x8] sm:$0xff]   ;;  %v909_v43 = vld [vmem:[#allocation8 + $0x50] sm:$0xff]   ;;  %v1079_v9 = vmov 0.0   ;;  %vm1080_vm2 = vmmov 0   ;;  %s1081_s30 = smov [#allocation11]  }
  0x68   :  { %792 = vmatpush3.bf16.msra.mxu0 %v906_v40  ;;  %v910_v44 = vld [vmem:[#allocation8 + $0x10] sm:$0xff]   ;;  %v911_v45 = vld [vmem:[#allocation8 + $0x58] sm:$0xff]   ;;  %v913_v47 = vld [vmem:[#allocation8 + $0x60] sm:$0xff]   ;;  %s718_s11 = sshll.u32 %s1081_s30, 4  ;;  %s719_s11 = int_to_ptr.vmem [resolvable:$true] %s718_s11 }
  0x69   :  { %385 = vmatpush1.bf16.msra.mxu1 %v868_v14  ;;  %793 = vmatprep.subr.bf16.mxu0 %v907_v41  ;;  %v912_v46 = vld [vmem:[#allocation8 + $0x18] sm:$0xff]   ;;  %v914_v48 = vld [vmem:[#allocation8 + $0x20] sm:$0xff]   ;;  %v915_v49 = vld [vmem:[#allocation8 + $0x68] sm:$0xff]   ;;  %p1044_p13 = scmp.lt.s32.totalorder %s719_s11, %s719_s11 }
  0x6a   :  { %386 = vmatprep.subr.bf16.mxu1 %v869_v15  ;;  %v916_v50 = vld [vmem:[#allocation8 + $0x28] sm:$0xff]   ;;  %v101_v54 = vld [vmem:[%s1244_s2] sm:$0x3]  ;;  %v919_v7 = vld [vmem:[#allocation8 + $0x78] sm:$0xff]  }
  0x6b   :  { %v106_v56 = vrot.slane %v101_v54, %v105_v53  ;;  %v110_v57 = vrot.slane %v101_v54, %v109_v55  ;;  %v917_v5 = vld [vmem:[#allocation8 + $0x70] sm:$0xff]   ;;  %v920_v8 = vld [vmem:[#allocation8 + $0x38] sm:$0xff]  }
  0x6c   :  { %794 = vmatpush3.bf16.msra.mxu0 %v908_v42  ;;  %v918_v6 = vld [vmem:[#allocation8 + $0x30] sm:$0xff]  }
  0x6d   :  { %387 = vmatpush1.bf16.msra.mxu1 %v871_v16  ;;  %795 = vmatprep.subr.bf16.mxu0 %v909_v43  ;;  %v206_v10 = vld [vmem:[%s1246_s4] sm:$0x3] }
  0x6e   :  { %388 = vmatprep.subr.bf16.mxu1 %v872_v17  ;;  %v211_v11 = vrot.slane %v206_v10, %v105_v53  ;;  %v215_v12 = vrot.slane %v206_v10, %v109_v55  ;;  %v782_v40 = vld [vmem:[%s1250_s8] ss:$0 sm:$0xff] }
  0x70   :  { %796 = vmatpush3.bf16.msra.mxu0 %v910_v44 }
  0x71   :  { %389 = vmatpush1.bf16.msra.mxu1 %v874_v18  ;;  %797 = vmatprep.subr.bf16.mxu0 %v911_v45 }
  0x72   :  { %390 = vmatprep.subr.bf16.mxu1 %v875_v19 }
  0x74   :  { %798 = vmatpush3.bf16.msra.mxu0 %v912_v46 }
  0x75   :  { %391 = vmatpush1.bf16.msra.mxu1 %v877_v20  ;;  %799 = vmatprep.subr.bf16.mxu0 %v913_v47 }
  0x76   :  { %392 = vmatprep.subr.bf16.mxu1 %v878_v21 }
  0x78   :  { %800 = vmatpush3.bf16.msra.mxu0 %v914_v48 }
  0x79   :  { %393 = vmatpush1.bf16.msra.mxu1 %v880_v22  ;;  %801 = vmatprep.subr.bf16.mxu0 %v915_v49  ;;  %v921_v22 = vld [vmem:[#allocation10] sm:$0xff]  }
  0x7a   :  { %394 = vmatprep.subr.bf16.mxu1 %v881_v23 }
  0x7c   :  { %802 = vmatpush3.bf16.msra.mxu0 %v916_v50 }
  0x7d   :  { %395 = vmatpush1.bf16.msra.mxu1 %v883_v24  ;;  %803 = vmatprep.subr.bf16.mxu0 %v917_v5  ;;  %v922_v24 = vld [vmem:[#allocation10 + $0x8] sm:$0xff]  }
  0x7e   :  { %396 = vmatprep.subr.bf16.mxu1 %v884_v25  ;;  %v923_v25 = vld [vmem:[#allocation10 + $0x10] sm:$0xff]  }
  0x80   :  { %804 = vmatpush3.bf16.msra.mxu0 %v918_v6 }
  0x81   :  { %397 = vmatpush1.bf16.msra.mxu1 %v886_v26  ;;  %805 = vmatprep.subr.bf16.mxu0 %v919_v7  ;;  %v924_v26 = vld [vmem:[#allocation10 + $0x18] sm:$0xff]  }
  0x82   :  { %398 = vmatprep.subr.bf16.mxu1 %v887_v27  ;;  %v925_v27 = vld [vmem:[#allocation10 + $0x20] sm:$0xff]  }
  0x84   :  { %806 = vmatpush3.bf16.msra.mxu0 %v920_v8 }
  0x85   :  { %399 = vmatpush1.bf16.msra.mxu1 %v889_v28  ;;  %822 = vmatprep.subr.bf16.mxu0 %v1079_v9  ;;  %v926_v28 = vld [vmem:[#allocation10 + $0x28] sm:$0xff]  }
  0x86   :  { %400 = vmatprep.subr.bf16.mxu1 %v890_v29  ;;  %v927_v29 = vld [vmem:[#allocation10 + $0x30] sm:$0xff]  }
  0x89   :  { %401 = vmatpush1.bf16.msra.mxu1 %v892_v30  ;;  %v928_v30 = vld [vmem:[#allocation10 + $0x38] sm:$0xff]  }
  0x8a   :  { %402 = vmatprep.subr.bf16.mxu1 %v893_v31 }
  0x8d   :  { %403 = vmatpush1.bf16.msra.mxu1 %v895_v32  ;;  %v765_v32 = vld [vmem:[%s1248_s6] ss:$0 sm:$0xff]  ;;  %s1039_s6 = scalar_lea.vmem %s719_s11, 32 }
  0x8e   :  { %404 = vmatprep.subr.bf16.mxu1 %v896_v33  ;;  %p1040_p12 = scmp.ne.s32.totalorder %s719_s11, %s1039_s6  ;;  %p1045_p0 = scmp.lt.s32.totalorder %s1039_s6, %s1039_s6 }
  0x90   :  { %p1046_p1 = por %p1045_p0, %p1044_p13 }
  0x91   :  { %405 = vmatpush1.bf16.msra.mxu1 %v898_v34 }
  0x92   :  { %406 = vmatprep.subr.bf16.mxu1 %v899_v35  ;;  %p1047_p2 = pnand %p1046_p1, %p1040_p12 }
  0x95   :  { %407 = vmatpush1.bf16.msra.mxu1 %v901_v36 }
  0x96   :  { %408 = vmatprep.subr.bf16.mxu1 %v902_v37 }
  0x99   :  { %409 = vmatpush1.bf16.msra.mxu1 %v904_v38 }
 0x134   :  { %v163_v58 = vpop.f32.mrb[0].mxu0 }
 0x135   :  { %v164_v59 = vadd.f32 %v163_v58, %v106_v56  ;;  %v165_v60 = vpop.f32.mrb[1].mxu0 }
 0x136   :  { %v166_v61 = vadd.f32 %v165_v60, %v110_v57  ;;  %v167_v62 = vpop.f32.mrb[2].mxu0 }
 0x137   :  { %v170_v63 = vpack.c.bf16 %v164_v59, %v164_v59  ;;  %v168_v1 = vpop.f32.mrb[3].mxu0 }
 0x138   :  { %v171_v2 = vpack.c.bf16 %v166_v61, %v166_v61 }
 0x139   :  { %v172_v4 = vmax.bf16 %v1078_v0, %v170_v63 }
 0x13a   :  { %v173_v3 = vmax.bf16 %v1078_v0, %v171_v2 }
 0x13c   :  { %410 = vmatprep.mubr.bf16.mxu1 %v173_v3 }
 0x13d   :  { %411 = vmatmul.mubr.bf16.vlgmr.msra.gmra.mrb[0].mxu1 %v172_v4 }
 0x210   :  { %v412_v13 = vpop.f32.mrb[0].mxu1 }
 0x211   :  { %v413_v14 = vadd.f32 %v412_v13, %v211_v11  ;;  %v414_v15 = vpop.f32.mrb[1].mxu1 }
 0x212   :  { %v415_v16 = vadd.f32 %v414_v15, %v215_v12  ;;  %v416_v17 = vpop.f32.mrb[2].mxu1 }
 0x213   :  { %v419_v18 = vpack.c.bf16 %v413_v14, %v413_v14  ;;  %v417_v19 = vpop.f32.mrb[3].mxu1 }
 0x214   :  { %v420_v20 = vpack.c.bf16 %v415_v16, %v415_v16 }
 0x215   :  { %v421_v23 = vmax.bf16 %v1078_v0, %v419_v18 }
 0x216   :  { %v422_v21 = vmax.bf16 %v1078_v0, %v420_v20 }
 0x218   :  { %590 = vmatprep.mubr.bf16.mxu0 %v422_v21 }
 0x219   :  { %591 = vmatmul.mubr.bf16.vlgmr.msra.gmra.mrb[4].mxu0 %v421_v23 }
 0x21a   :  { %823 = vmatpush3.bf16.msra.mxu0 %v921_v22  ;;  %838 = vmatprep.mubr.msk.bf16.mxu0 %vm1080_vm2, %v1079_v9 }
 0x21b   :  { %824 = vmatprep.subr.bf16.mxu0 %v1079_v9 }
 0x21e   :  { %825 = vmatpush3.bf16.msra.mxu0 %v922_v24 }
 0x21f   :  { %826 = vmatprep.subr.bf16.mxu0 %v1079_v9 }
 0x222   :  { %827 = vmatpush3.bf16.msra.mxu0 %v923_v25 }
 0x223   :  { %828 = vmatprep.subr.bf16.mxu0 %v1079_v9 }
 0x226   :  { %829 = vmatpush3.bf16.msra.mxu0 %v924_v26 }
 0x227   :  { %830 = vmatprep.subr.bf16.mxu0 %v1079_v9 }
 0x22a   :  { %831 = vmatpush3.bf16.msra.mxu0 %v925_v27 }
 0x22b   :  { %832 = vmatprep.subr.bf16.mxu0 %v1079_v9 }
 0x22e   :  { %833 = vmatpush3.bf16.msra.mxu0 %v926_v28 }
 0x22f   :  { %834 = vmatprep.subr.bf16.mxu0 %v1079_v9 }
 0x232   :  { %835 = vmatpush3.bf16.msra.mxu0 %v927_v29 }
 0x233   :  { %836 = vmatprep.subr.bf16.mxu0 %v1079_v9 }
 0x236   :  { %837 = vmatpush3.bf16.msra.mxu0 %v928_v30 }
 0x2ec   :  { %v807_v31 = vpop.f32.mrb[4].mxu0 }
 0x2ed   :  { %v808_v33 = vpop.f32.mrb[5].mxu0 }
 0x2ee   :  { %v809_v34 = vadd.f32 %v808_v33, %v807_v31  ;;  %v810_v35 = vpop.f32.mrb[6].mxu0 }
 0x2ef   :  { %v811_v36 = vpop.f32.mrb[7].mxu0 }
 0x2f0   :  { %v593_v37 = vadd.f32 %v809_v34, %v765_v32 }
 0x2f2   :  { %v598_v38 = vpack.c.bf16 %v593_v37, %v593_v37 }
 0x2f4   :  { %v599_v39 = vmax.bf16 %v1078_v0, %v598_v38 }
 0x2f6   :  { %839 = vmatmul.mubr.bf16.vlgmr.msra.gmra.mrb[8].mxu0 %v599_v39 }
 0x3c9   :  { %v705_v41 = vpop.f32.mrb[8].mxu0 }
 0x3ca   :  { %v706_v42 = vadd.f32 %v782_v40, %v705_v41  ;;  %v840_v43 = vpop.f32.mrb[9].mxu0 }
 0x3cb   :  { %v708_v44 = vpop.f32.mrb[10].mxu0 }
 0x3cc   :  { %711 = vst [vmem:[#allocation11] sm:$0x3] %v706_v42  ;;  %v841_v45 = vpop.f32.mrb[11].mxu0 }
 0x3cd   :  { %1050 = shalt.err (!%p1047_p2)
}
 0x3ce   :  { %s1051_s8 = scalar_lea.hbm %s1251_s9, 32 }
 0x3cf   :  { %p1052_p3 = scmp.ne.s32.totalorder %s1251_s9, %s1051_s8  ;;  %p1055_p4 = scmp.lt.u32.totalorder %s1051_s8, %s1251_s9 }
 0x3d1   :  { %p1057_p5 = pnand %p1055_p4, %p1052_p3 }
 0x3d3   :  { %1060 = shalt.err (!%p1057_p5)
}
 0x3d4   :  { %721 = dma.vmem_to_hbm [thread:$0]  %s719_s11, 32, %s1251_s9, [#allocation4]  }
 0x3d5   :  { %1067 = dma.done.wait [#allocation4], 32  }
 0x3d6   :  { %1068 = vsyncadd [#allocation4], 4294967264 }
 0x3d7   :  { %725 = vsyncpa [#allocation3], 1 }
 0x3d8   :  { %726 = vsyncpa [#allocation6], 1 }
 0x3d9   :  { %727 = vsyncpa [#allocation9], 1 }
 0x3da   :  { %728 = vsyncpa [#allocation4], 1 }

</bundles_post_ra>
